<compile_context>
chip_gen: v5e
topology: v5e:2x2
jax: 0.10.0
libtpu: 0.0.40
codegen_flags: <defaults>
</compile_context>

<pallas_src>
import jax
import jax.numpy as jnp
from jax.experimental import pallas as pl
from jax.experimental.pallas import tpu as pltpu

LANES = 128
_MIB = 1 << 20


def _target_tile_bytes() -> int:
    """Per-generation tile byte budget (see perf review)."""
    try:
        kind = jax.devices()[0].device_kind.lower()
    except Exception:
        kind = ""
    if "v7" in kind or "7x" in kind:
        return 8 * _MIB          # v7x: 3.2 TB/s HBM, amortize the 0.35us/step
    if "v6" in kind:
        return 4 * _MIB          # v6e: fits default 32 MiB scoped VMEM
    return 2 * _MIB              # v5e / unknown: 4x2 MiB stays under 16 MiB


def _pick_tile_rows(rows: int, itemsize: int, tile_bytes: int) -> int:
    """Dtype-aware tile rows; multiple of 16 for bf16 sublane packing."""
    tile_r = max(16, tile_bytes // (LANES * itemsize))
    tile_r -= tile_r % 16
    if tile_r >= rows:
        if rows >= 4096:
            # Keep >= 2 grid steps so the "parallel" axis can shard across
            # the two TensorCores on v7x instead of one tile eating it all.
            tile_r = (((rows + 1) // 2) + 7) // 8 * 8
        else:
            tile_r = rows  # single block == full array dim (always legal)
    return tile_r


def _sigmoid_beta_kernel(alpha_ref, x_ref, o_ref):
    # alpha_ref: (1,) f32 scalar in SMEM
    # x_ref / o_ref: (tile_r, 128) VMEM tiles
    alpha = alpha_ref[0]

    @pl.when(alpha != 0.0)
    def _():
        x = x_ref[...].astype(jnp.float32)
        o_ref[...] = jax.nn.sigmoid(alpha * x).astype(o_ref.dtype)

    @pl.when(alpha == 0.0)
    def _():
        # Identity branch for traced alpha == 0: straight copy, no EUP work.
        o_ref[...] = x_ref[...]


def _launch(x2d, alpha_arr, out_dtype):
    rows = x2d.shape[0]
    itemsize = jnp.dtype(out_dtype).itemsize
    tile_r = _pick_tile_rows(rows, itemsize, _target_tile_bytes())
    tile_bytes = tile_r * LANES * itemsize
    # in + out, double-buffered, plus slack; capped well under v7x's 64 MiB.
    vmem_limit = int(min(4 * tile_bytes + 8 * _MIB, 48 * _MIB))

    n_elems = rows * LANES
    cost = pl.CostEstimate(
        flops=n_elems,                 # one multiply per element
        transcendentals=n_elems,       # one sigmoid per element
        bytes_accessed=2 * n_elems * itemsize,
    )

    return pl.pallas_call(
        _sigmoid_beta_kernel,
        out_shape=jax.ShapeDtypeStruct((rows, LANES), out_dtype),
        grid=(pl.cdiv(rows, tile_r),),  # ragged last block is masked by Pallas
        in_specs=[
            pl.BlockSpec(memory_space=pltpu.MemorySpace.SMEM),
            pl.BlockSpec((tile_r, LANES), lambda i: (i, 0)),
        ],
        out_specs=pl.BlockSpec((tile_r, LANES), lambda i: (i, 0)),
        compiler_params=pltpu.CompilerParams(
            dimension_semantics=("parallel",),
            vmem_limit_bytes=vmem_limit,
        ),
        cost_estimate=cost,
    )(alpha_arr, x2d)


def sigmoid_beta(x, alpha):
    """x: any-shape float array (e.g. NCHW). alpha: scalar parameter."""
    orig_shape = x.shape
    orig_dtype = x.dtype
    total = x.size

    # Trace-time short-circuit: concrete alpha == 0 -> identity, no launch,
    # no HBM traffic at all.
    try:
        if float(alpha) == 0.0:
            return x
    except Exception:
        pass  # alpha is a tracer; the in-kernel pl.when handles the branch.

    alpha_arr = jnp.asarray(alpha, dtype=jnp.float32).reshape((1,))

    def _tail_compute(t):
        # <128-element remainder handled in plain jnp with identical semantics.
        y = jax.nn.sigmoid(alpha_arr[0] * t.astype(jnp.float32)).astype(orig_dtype)
        return jnp.where(alpha_arr[0] == 0.0, t, y)

    main = total - (total % LANES)

    if main == 0:
        # Tiny tensor (< 128 elems): not worth a kernel launch.
        return jnp.reshape(_tail_compute(jnp.reshape(x, (-1,))), orig_shape)

    if main == total:
        # Common case: fully 128-divisible, zero padding work.
        x2d = jnp.reshape(x, (total // LANES, LANES))
        out2d = _launch(x2d, alpha_arr, orig_dtype)
        return jnp.reshape(out2d, orig_shape)

    # Ragged tail: kernel on the 128-divisible prefix, tail in plain jnp.
    xf = jnp.reshape(x, (-1,))
    x2d = jnp.reshape(xf[:main], (main // LANES, LANES))
    out_main = jnp.reshape(_launch(x2d, alpha_arr, orig_dtype), (-1,))
    out_tail = _tail_compute(xf[main:])
    return jnp.reshape(jnp.concatenate([out_main, out_tail]), orig_shape)


if __name__ == "__main__":
    key = jax.random.PRNGKey(0)
    # Deterministic parameter init, matching nn.Parameter(torch.tensor(1.5)).
    alpha = jnp.float32(1.5)

    # Small NCHW input consistent with a conv-style activation module.
    x = jax.random.normal(key, (2, 4, 16, 16), dtype=jnp.float32)

    out = jax.block_until_ready(sigmoid_beta(x, alpha))
    ref = jax.nn.sigmoid(alpha * x)
    assert out.shape == x.shape and out.dtype == x.dtype
    assert jnp.max(jnp.abs(out - ref)) < 1e-6

    # alpha == 0, concrete: trace-time identity short-circuit.
    out0 = jax.block_until_ready(sigmoid_beta(x, jnp.float32(0.0)))
    assert jnp.max(jnp.abs(out0 - x)) == 0.0

    # alpha == 0, traced (under jit): exercises the in-kernel pl.when branch.
    jit_fn = jax.jit(sigmoid_beta)
    out0t = jax.block_until_ready(jit_fn(x, jnp.float32(0.0)))
    assert jnp.max(jnp.abs(out0t - x)) == 0.0

    # bf16 input: compute in f32, explicit cast back to bf16 on store.
    xb = x.astype(jnp.bfloat16)
    outb = jax.block_until_ready(sigmoid_beta(xb, alpha))
    refb = jax.nn.sigmoid(alpha * xb.astype(jnp.float32)).astype(jnp.bfloat16)
    assert outb.dtype == jnp.bfloat16
    assert jnp.max(jnp.abs(outb.astype(jnp.float32)
                           - refb.astype(jnp.float32))) < 2e-2

    # Shape not divisible by 128: kernel on prefix + jnp tail (no pad copies).
    xr = jax.random.normal(jax.random.PRNGKey(1), (2, 3, 50), dtype=jnp.float32)
    outr = jax.block_until_ready(sigmoid_beta(xr, alpha))
    refr = jax.nn.sigmoid(alpha * xr)
    assert outr.shape == xr.shape
    assert jnp.max(jnp.abs(outr - refr)) < 1e-6

    print("KERNEL_OK")
</pallas_src>

<mosaic_0001>
module attributes {stable_mosaic.version = 11 : i64} {
  func.func @_sigmoid_beta_kernel(%arg0: i32, %arg1: memref<1xf32, #tpu.memory_space<smem>>, %arg2: memref<16x128xf32, #tpu.memory_space<vmem>>, %arg3: memref<16x128xf32, #tpu.memory_space<vmem>>) attributes {dimension_semantics = [#tpu.dimension_semantics<parallel>], iteration_bounds = array<i64: 1>, scalar_prefetch = 0 : i64, scratch_operands = 0 : i64, tpu.core_type = #tpu.core_type<tc>, window_params = [{transform_indices = @transform_0, window_bounds = array<i64: 1>}, {transform_indices = @transform_1, window_bounds = array<i64: 16, 128>}, {transform_indices = @transform_2, window_bounds = array<i64: 16, 128>}]} {
    %c0 = arith.constant 0 : index
    %0 = memref.load %arg1[%c0] : memref<1xf32, #tpu.memory_space<smem>>
    %cst = arith.constant 0.000000e+00 : f32
    %1 = arith.cmpf one, %0, %cst : f32
    %2 = arith.extui %1 : i1 to i32
    %c0_i32 = arith.constant 0 : i32
    %3 = arith.cmpi ne, %2, %c0_i32 : i32
    scf.if %3 {
      %c0_2 = arith.constant 0 : index
      %c0_3 = arith.constant 0 : index
      %7 = vector.load %arg2[%c0_2, %c0_3] : memref<16x128xf32, #tpu.memory_space<vmem>>, vector<16x128xf32>
      %8 = vector.broadcast %0 : f32 to vector<16x128xf32>
      %9 = arith.mulf %8, %7 : vector<16x128xf32>
      %10 = arith.negf %9 : vector<16x128xf32>
      %11 = math.exp %10 : vector<16x128xf32>
      %cst_4 = arith.constant 1.000000e+00 : f32
      %12 = vector.broadcast %cst_4 : f32 to vector<16x128xf32>
      %13 = arith.addf %12, %11 : vector<16x128xf32>
      %14 = arith.divf %12, %13 : vector<16x128xf32>
      %c0_5 = arith.constant 0 : index
      %c0_6 = arith.constant 0 : index
      %15 = vector.load %arg3[%c0_5, %c0_6] : memref<16x128xf32, #tpu.memory_space<vmem>>, vector<16x128xf32>
      tpu.vector_store %arg3[%c0_5, %c0_6], %14 {strides = array<i32>} : memref<16x128xf32, #tpu.memory_space<vmem>>, vector<16x128xf32>,
    } else {
    }
    %cst_0 = arith.constant 0.000000e+00 : f32
    %4 = arith.cmpf oeq, %0, %cst_0 : f32
    %5 = arith.extui %4 : i1 to i32
    %c0_i32_1 = arith.constant 0 : i32
    %6 = arith.cmpi ne, %5, %c0_i32_1 : i32
    scf.if %6 {
      %c0_2 = arith.constant 0 : index
      %c0_3 = arith.constant 0 : index
      %7 = vector.load %arg2[%c0_2, %c0_3] : memref<16x128xf32, #tpu.memory_space<vmem>>, vector<16x128xf32>
      %c0_4 = arith.constant 0 : index
      %c0_5 = arith.constant 0 : index
      %8 = vector.load %arg3[%c0_4, %c0_5] : memref<16x128xf32, #tpu.memory_space<vmem>>, vector<16x128xf32>
      tpu.vector_store %arg3[%c0_4, %c0_5], %7 {strides = array<i32>} : memref<16x128xf32, #tpu.memory_space<vmem>>, vector<16x128xf32>,
    } else {
    }
    return
  }
  func.func @transform_0(%arg0: i32) -> i32 {
    %c0_i32 = arith.constant 0 : i32
    %c0_i32_0 = arith.constant 0 : i32
    return %c0_i32 : i32
  }
  func.func @transform_1(%arg0: i32) -> (i32, i32) {
    %c0_i32 = arith.constant 0 : i32
    %c0_i32_0 = arith.constant 0 : i32
    return %arg0, %c0_i32 : i32, i32
  }
  func.func @transform_2(%arg0: i32) -> (i32, i32) {
    %c0_i32 = arith.constant 0 : i32
    %c0_i32_0 = arith.constant 0 : i32
    return %arg0, %c0_i32 : i32, i32
  }
}

</mosaic_0001>

<bundles_post_ra>
// kernel: tpu_custom_call.1
= control target key start
LH: loop header
LB: loop body
LE: loop exit
PB: predicated region body
PF: predicated region fallthrough
CT: control target
= control target key end

     0   :  { %8 = vsyncpa [#allocation4], 0  ;;  %s212_s0 = inlined_call_operand.<no memory space> [shape: f32[1], index: 0, kind: input, shape index: {}]   ;;  %s213_s1 = inlined_call_operand.hbm [shape: f32[16,128], index: 1, kind: input, shape index: {}]   ;;  %s214_s2 = inlined_call_operand.hbm [shape: f32[16,128], index: 2, kind: output, shape index: {}]  }
   0x1   :  { %9 = vsyncpa [#allocation5], 0  ;;  %s16_s11 = sshll.u32 %s213_s1, 4  ;;  %s172_s12 = smov [#allocation3]   ;;  %s17_s11 = int_to_ptr.hbm [resolvable:$true] %s16_s11 }
   0x2   :  { %s18_s13 = sshll.u32 %s172_s12, 4  ;;  %s173_s14 = smov 128   ;;  %s19_s13 = int_to_ptr.vmem [resolvable:$true] %s18_s13 }
   0x3   :  { %s174_s15 = smov 8  }
   0x4   :  { %24 = dma.hbm_to_vmem [thread:$0]  %s17_s11, 256, %s19_s13, [#allocation4], %s173_s14, %s173_s14, %s174_s15  }
   0x5   :  { %168 = dma.done.wait [#allocation4], 256  }
   0x6   :  { %169 = vsyncadd [#allocation4], 4294967040  ;;  %p30_p0 = scmp.ne.f32.partialorder %s212_s0, 0.0 }
   0x7   :  { %v34_v0 = vld [vmem:[#allocation3] sm:$0xff] (%p30_p0)  ;;  %v36_v1 = vstv (%p30_p0), %s212_s0  ;;  %v35_v2 = vld [vmem:[#allocation3 + $0x8] sm:$0xff] (%p30_p0) }
   0x8   :  { %33 = sbr.rel (!%p30_p0) target bundleno = 40 (0x28), region = 17  ;;  %v37_v3 = vmul.f32 (%p30_p0), %v36_v1, %v34_v0  ;;  %v38_v4 = vmul.f32 (%p30_p0), %v36_v1, %v35_v2 }
   0xa   :  { %v106_v5 = vmul.f32 (%p30_p0), -1.442695, %v37_v3  ;;  %v107_v6 = vmul.f32 (%p30_p0), -1.442695, %v38_v4 }
   0xc   :  { %112 = vpow2.f32 (%p30_p0), %v106_v5 }
   0xd   :  { %114 = vpow2.f32 %v107_v6 }
  0x12   :  { %v113_v7 = vpop.eup %112 }
  0x13   :  { %v115_v8 = vpop.eup %114  ;;  %v45_v9 = vadd.f32 1.0, %v113_v7 }
  0x14   :  { %v46_v10 = vadd.f32 1.0, %v115_v8 }
  0x15   :  { %116 = vrcp.f32 %v45_v9  ;;  %vm52_vm0 = vweird.f32 %v45_v9  ;;  %v58_v14 = vand.u32 2147483648, %v45_v9  ;;  %v56_v17 = vand.u32 2147483647, %v45_v9 }
  0x16   :  { %118 = vrcp.f32 %v46_v10  ;;  %v73_v18 = vand.u32 2147483648, %v46_v10  ;;  %vm67_vm2 = vweird.f32 %v46_v10  ;;  %v71_v20 = vand.u32 2147483647, %v46_v10 }
  0x17   :  { %v59_v22 = vor.u32 1.1754944e-38, %v58_v14  ;;  %vm57_vm5 = vcmp.eq.f32.partialorder %v56_v17, 8.507059e+37 }
  0x18   :  { %v74_v25 = vor.u32 1.1754944e-38, %v73_v18  ;;  %vm72_vm7 = vcmp.eq.f32.partialorder %v71_v20, 8.507059e+37 }
  0x1b   :  { %v117_v11 = vpop.eup %116 }
  0x1c   :  { %v119_v12 = vpop.eup %118  ;;  %v48_v13 = vmul.f32 %v117_v11, %v45_v9  ;;  %vm53_vm1 = vweird.f32 %v117_v11 }
  0x1d   :  { %v63_v15 = vmul.f32 %v119_v12, %v46_v10  ;;  %vm68_vm3 = vweird.f32 %v119_v12  ;;  %vm54_vm4 = vmor %vm52_vm0, %vm53_vm1 }
  0x1e   :  { %v49_v16 = vsub.f32 1.0, %v48_v13  ;;  %vm69_vm6 = vmor %vm67_vm2, %vm68_vm3 }
  0x1f   :  { %v64_v19 = vsub.f32 1.0, %v63_v15 }
  0x20   :  { %v50_v21 = vmul.f32 %v117_v11, %v49_v16 }
  0x21   :  { %v65_v23 = vmul.f32 %v119_v12, %v64_v19 }
  0x22   :  { %v51_v24 = vadd.f32 %v117_v11, %v50_v21 }
  0x23   :  { %v66_v26 = vadd.f32 %v119_v12, %v65_v23 }
  0x24   :  { %v55_v27 = vsel %vm54_vm4, %v117_v11, %v51_v24 }
  0x25   :  { %v60_v28 = vsel %vm57_vm5, %v59_v22, %v55_v27  ;;  %v70_v29 = vsel %vm69_vm6, %v119_v12, %v66_v26 }
  0x26   :  { %77 = vst [vmem:[#allocation6] sm:$0xff] %v60_v28  ;;  %v75_v30 = vsel %vm72_vm7, %v74_v25, %v70_v29 }
  0x27   :  { %78 = vst [vmem:[#allocation6 + $0x8] sm:$0xff] %v75_v30 }
  0x28 PF:  { %p79_p1 = scmp.eq.f32.partialorder %s212_s0, 0.0 }
  0x29   :  { %v83_v31 = vld [vmem:[#allocation3] sm:$0xff] (%p79_p1)  ;;  %v84_v32 = vld [vmem:[#allocation3 + $0x8] sm:$0xff] (%p79_p1) }
  0x2a   :  { %82 = sbr.rel (!%p79_p1) target bundleno = 47 (0x2f), region = 21  ;;  %85 = vst [vmem:[#allocation6] sm:$0xff] (%p79_p1), %v83_v31 }
  0x2b   :  { %86 = vst [vmem:[#allocation6 + $0x8] sm:$0xff] (%p79_p1), %v84_v32 }
  0x2f PF:  { %s93_s23 = sshll.u32 %s214_s2, 4  ;;  %s175_s24 = smov [#allocation6]   ;;  %s94_s23 = int_to_ptr.hbm [resolvable:$true] %s93_s23 }
  0x30   :  { %s91_s25 = sshll.u32 %s175_s24, 4  ;;  %s92_s25 = int_to_ptr.vmem [resolvable:$true] %s91_s25 }
  0x31   :  { %99 = dma.vmem_to_hbm [thread:$0]  %s92_s25, 256, %s94_s23, [#allocation5], %s173_s14, %s173_s14, %s174_s15  }
  0x32   :  { %170 = dma.done.wait [#allocation5], 256  }
  0x33   :  { %171 = vsyncadd [#allocation5], 4294967040 }
  0x34   :  { %104 = vsyncpa [#allocation4], 1 }
  0x35   :  { %105 = vsyncpa [#allocation5], 1 }

</bundles_post_ra>
